<compile_context>
chip_gen: v5e
topology: v5e:2x2
jax: 0.10.0
libtpu: 0.0.40
codegen_flags: <defaults>
</compile_context>

<pallas_src>
import jax
import jax.numpy as jnp
import numpy as np
from jax.experimental import pallas as pl
from jax.experimental.pallas import tpu as pltpu

EPS = 1e-5        # PyTorch InstanceNorm2d default eps
LANE = 128        # TPU vreg lane width
_NEG_BIG = -1e30  # masked-out value for max reductions (never exponentiated)


# ----------------------------- in-kernel helpers --------------------------- #

def _lane_partial_sum(x):
    """(C, hwp) -> (C, LANE) partial sums via VPU adds (hwp % LANE == 0)."""
    hwp = x.shape[1]
    part = x[:, 0:LANE]
    for j in range(1, hwp // LANE):
        part = part + x[:, j * LANE:(j + 1) * LANE]
    return part


def _channel_sum(x):
    """Per-channel sum over the lane (HW) axis: (C, hwp) -> (C, 1).
    VPU chunk-adds into one 128-lane partial, then a single small XLU reduce."""
    return jnp.sum(_lane_partial_sum(x), axis=1, keepdims=True)


def _global_max(x):
    """(C, hwp) -> (1, 1) global max; VPU chunk-max then one small XLU reduce."""
    hwp = x.shape[1]
    part = x[:, 0:LANE]
    for j in range(1, hwp // LANE):
        part = jnp.maximum(part, x[:, j * LANE:(j + 1) * LANE])
    return jnp.max(jnp.max(part, axis=1, keepdims=True), axis=0, keepdims=True)


def _accum_lanes(acc, x):
    """acc (C, LANE) += lane-partial sums of x (C, hwp).  Pure VPU adds; the
    cross-lane collapse of acc happens exactly once at the end of the kernel."""
    hwp = x.shape[1]
    for j in range(hwp // LANE):
        acc = acc + x[:, j * LANE:(j + 1) * LANE]
    return acc


def _collapse(acc):
    """(C, LANE) running accumulator -> (1, 1) total (one XLU lane+sublane reduce)."""
    return jnp.sum(jnp.sum(acc, axis=1, keepdims=True), axis=0, keepdims=True)


def _instance_norm_scaled(x, hw, scale, valid):
    """Two-pass (numerically stable) per-channel instance norm over the HW axis
    with the 1/T factor folded into the per-channel scale.  x: (C, hwp) f32.
    `valid` masks lane padding (None when hwp == hw)."""
    inv_n = 1.0 / float(hw)
    mean = _channel_sum(x) * inv_n                        # zero padding adds 0
    xc = x - mean
    if valid is not None:
        xc = jnp.where(valid, xc, 0.0)                    # keep pad lanes out of the stats
    var = jnp.maximum(_channel_sum(xc * xc) * inv_n, 0.0)  # clamp: no rsqrt(negative)
    return xc * (jax.lax.rsqrt(var + EPS) * scale)        # (C,1) column scale, EUP rsqrt


# ----------------------------- kernel -------------------------------------- #

def _make_distill_kernel(level_shapes, T, coef):
    """level_shapes: tuple of (C, hw, hw_padded) per FPN level (static)."""
    num_levels = len(level_shapes)
    assert num_levels >= 1
    n_total = float(sum(c * hw for (c, hw, _) in level_shapes))
    inv_T = 1.0 / T
    C = level_shapes[0][0]

    def kernel(w_ref, *refs):
        s_refs = refs[:num_levels]
        t_refs = refs[num_levels:2 * num_levels]
        o_ref = refs[2 * num_levels]

        # Adapter weight loaded once; bf16 operands feed the MXU, f32 accumulate.
        w_bf = w_ref[...].astype(jnp.bfloat16)

        # Streaming (flash-style) state over the virtual concat of all levels:
        # running maxes (1,1) + lane-partial accumulators (C,128) kept on the VPU.
        zs_acc = jnp.zeros((C, LANE), jnp.float32)        # sum exp(s - ms)
        zt_acc = jnp.zeros((C, LANE), jnp.float32)        # sum exp(t - mt)
        a_acc = jnp.zeros((C, LANE), jnp.float32)         # sum exp(t - mt) * (t - s)
        ms = mt = None

        for l in range(num_levels):
            _, hw, hw_p = level_shapes[l]
            x_s = s_refs[l][0]                            # (C, hw_p), batch row 0 only
            x_t = t_refs[l][0].astype(jnp.float32)

            if hw_p != hw:                                # lane-padding mask for this level
                lane = jax.lax.broadcasted_iota(jnp.int32, (C, hw_p), 1)
                valid = lane < hw
            else:
                valid = None

            # Adapter (1x1 conv) as a single MXU matmul; the MXU is otherwise idle.
            y = jnp.dot(w_bf, x_s.astype(jnp.bfloat16),
                        preferred_element_type=jnp.float32)      # (C, hw_p) f32

            s_l = _instance_norm_scaled(y, hw, inv_T, valid)     # student logits / T
            t_l = _instance_norm_scaled(x_t, hw, inv_T, valid)   # teacher logits / T

            if valid is not None:
                ms_l = _global_max(jnp.where(valid, s_l, _NEG_BIG))
                mt_l = _global_max(jnp.where(valid, t_l, _NEG_BIG))
            else:
                ms_l = _global_max(s_l)
                mt_l = _global_max(t_l)

            if l == 0:
                ms_new, mt_new = ms_l, mt_l
            else:
                ms_new = jnp.maximum(ms, ms_l)
                mt_new = jnp.maximum(mt, mt_l)
                # Rescale running accumulators when the max moves (flash-style).
                zs_acc = zs_acc * jnp.exp(ms - ms_new)
                alpha_t = jnp.exp(mt - mt_new)
                zt_acc = zt_acc * alpha_t
                a_acc = a_acc * alpha_t

            e_s = jnp.exp(s_l - ms_new)                   # EUP
            e_t = jnp.exp(t_l - mt_new)
            if valid is not None:                         # pad lanes contribute nothing
                e_s = jnp.where(valid, e_s, 0.0)
                e_t = jnp.where(valid, e_t, 0.0)

            zs_acc = _accum_lanes(zs_acc, e_s)
            zt_acc = _accum_lanes(zt_acc, e_t)
            a_acc = _accum_lanes(a_acc, e_t * (t_l - s_l))
            ms, mt = ms_new, mt_new

        # Single final XLU collapse per accumulator.
        zs = _collapse(zs_acc)
        zt = _collapse(zt_acc)
        a = _collapse(a_acc)
        ls = ms + jnp.log(zs)                             # logsumexp(stu / T)
        lt = mt + jnp.log(zt)                             # logsumexp(tea / T)
        # sum_j p_j (log p_j - log q_j) = A / Zt + Ls - Lt ; mean over N, scale.
        o_ref[...] = (coef * T * T / n_total) * (a / zt + ls - lt)

    return kernel


# ----------------------------- wrapper -------------------------------------- #

def distill(stu_features, tea_features, adapter_w, T, coef):
    """Fused Pallas implementation of BaseDistillator.distill (returns kl_loss[0]).

    NOTE: the module returns kl_loss[0], so only batch row 0 is DMA'd/computed;
    rows 1..B-1 are dead work under the reference semantics.
    """
    assert len(stu_features) == len(tea_features)
    level_shapes = []
    stu_in, tea_in = [], []
    for s, t in zip(stu_features, tea_features):
        assert s.shape == t.shape
        B, C, H, W = s.shape
        hw = H * W
        hw_p = ((hw + LANE - 1) // LANE) * LANE           # lane-dense layout (pad + mask)
        level_shapes.append((C, hw, hw_p))
        s_flat = s.reshape(B, C, hw)                      # view-only reshape, native dtype
        t_flat = t.reshape(B, C, hw)
        if hw_p != hw:
            cfg = ((0, 0), (0, 0), (0, hw_p - hw))
            s_flat = jnp.pad(s_flat, cfg)
            t_flat = jnp.pad(t_flat, cfg)
        stu_in.append(s_flat)
        tea_in.append(t_flat)
    C = level_shapes[0][0]
    assert all(c == C for (c, _, _) in level_shapes)

    kernel = _make_distill_kernel(tuple(level_shapes), float(T), float(coef))

    in_specs = [pl.BlockSpec((C, C), lambda i: (0, 0))]
    for (_, _, hw_p) in level_shapes:                     # student levels: batch row 0 only
        in_specs.append(pl.BlockSpec((1, C, hw_p), lambda i: (0, 0, 0)))
    for (_, _, hw_p) in level_shapes:                     # teacher levels: batch row 0 only
        in_specs.append(pl.BlockSpec((1, C, hw_p), lambda i: (0, 0, 0)))

    # TODO(synk): at production FPN sizes (C~256, HW up to ~60k) add an HW-tile
    # grid axis per level (the streaming accumulators above already compose with
    # it), size tiles from pltpu.get_tpu_info().vmem_capacity_bytes (64 MiB on
    # v7x vs 128 MiB on v5e/v6e), tune pipeline_mode=pl.Buffered(2|3), and mark
    # the tile axis "parallel" to engage both v7x TensorCores.
    out = pl.pallas_call(
        kernel,
        out_shape=jax.ShapeDtypeStruct((1, 1), jnp.float32),
        grid=(1,),
        in_specs=in_specs,
        out_specs=pl.BlockSpec((1, 1), lambda i: (0, 0)),
        compiler_params=pltpu.CompilerParams(
            dimension_semantics=("arbitrary",)),
    )(adapter_w, *stu_in, *tea_in)
    return out[0, 0]


# ----------------------------- reference ------------------------------------ #

def _reference(stu_features, tea_features, adapter_w, T, coef):
    """Pure-JAX mirror of the PyTorch distill() math (bf16 features, bf16 adapter
    matmul with f32 accumulation — same dtype path as the kernel)."""
    def inorm(x):  # x: (B, C, HW) f32
        m = x.mean(-1, keepdims=True)
        v = ((x - m) ** 2).mean(-1, keepdims=True)
        return (x - m) / jnp.sqrt(v + EPS)

    B = stu_features[0].shape[0]
    w_bf = adapter_w.astype(jnp.bfloat16)
    stu_parts, tea_parts = [], []
    for s, t in zip(stu_features, tea_features):
        Bc, C, H, W = s.shape
        s_bf = s.reshape(Bc, C, H * W).astype(jnp.bfloat16)
        t32 = t.reshape(Bc, C, H * W).astype(jnp.float32)
        s_ad = jnp.einsum('oc,bcx->box', w_bf, s_bf,
                          preferred_element_type=jnp.float32)
        stu_parts.append(inorm(s_ad).reshape(B, -1))
        tea_parts.append(inorm(t32).reshape(B, -1))
    stu = jnp.concatenate(stu_parts, axis=1)
    tea = jnp.concatenate(tea_parts, axis=1)
    log_q = jax.nn.log_softmax(stu / T, axis=-1)
    p = jax.nn.softmax(tea / T, axis=-1)
    log_p = jax.nn.log_softmax(tea / T, axis=-1)
    kl = (p * (log_p - log_q)).mean(-1)
    return (coef * kl * (T * T))[0]


# ------------------------------- main ---------------------------------------- #

if __name__ == "__main__":
    key = jax.random.PRNGKey(0)
    k1, k2, k3, k4, k5 = jax.random.split(key, 5)

    B, C = 2, 16                     # cfg.MODEL.FPN.OUT_CHANNELS stand-in (bf16 sublane tile)
    T, coef = 2.0, 0.5               # LOSS_KL_T, LAMBDA

    # Two synthetic FPN levels (NCHW), stored bf16 (HBM-roofline at prod sizes).
    stu_features = [
        jax.random.normal(k1, (B, C, 16, 16), dtype=jnp.float32).astype(jnp.bfloat16),
        jax.random.normal(k2, (B, C, 8, 8), dtype=jnp.float32).astype(jnp.bfloat16),
    ]
    tea_features = [
        jax.random.normal(k3, (B, C, 16, 16), dtype=jnp.float32).astype(jnp.bfloat16),
        jax.random.normal(k4, (B, C, 8, 8), dtype=jnp.float32).astype(jnp.bfloat16),
    ]
    # Deterministic 1x1-conv adapter weight (C -> C).
    adapter_w = jax.random.normal(k5, (C, C), dtype=jnp.float32) * 0.1

    loss = distill(stu_features, tea_features, adapter_w, T, coef)
    loss = jax.block_until_ready(loss)

    ref = _reference(stu_features, tea_features, adapter_w, T, coef)
    np.testing.assert_allclose(np.asarray(loss), np.asarray(ref),
                               rtol=5e-4, atol=1e-6)

    print("KERNEL_OK")
</pallas_src>

<mosaic_0001>
module attributes {stable_mosaic.version = 11 : i64} {
  func.func @kernel(%arg0: i32, %arg1: memref<16x16xf32, #tpu.memory_space<vmem>>, %arg2: memref<1x16x256xbf16, #tpu.memory_space<vmem>>, %arg3: memref<1x16x128xbf16, #tpu.memory_space<vmem>>, %arg4: memref<1x16x256xbf16, #tpu.memory_space<vmem>>, %arg5: memref<1x16x128xbf16, #tpu.memory_space<vmem>>, %arg6: memref<1x1xf32, #tpu.memory_space<vmem>>) attributes {dimension_semantics = [#tpu.dimension_semantics<arbitrary>], iteration_bounds = array<i64: 1>, scalar_prefetch = 0 : i64, scratch_operands = 0 : i64, tpu.core_type = #tpu.core_type<tc>, window_params = [{pipeline_mode = #tpu.pipeline_mode<synchronous>, transform_indices = @transform_0, window_bounds = array<i64: 16, 16>}, {transform_indices = @transform_1, window_bounds = array<i64: 1, 16, 256>}, {transform_indices = @transform_2, window_bounds = array<i64: 1, 16, 128>}, {transform_indices = @transform_3, window_bounds = array<i64: 1, 16, 256>}, {transform_indices = @transform_4, window_bounds = array<i64: 1, 16, 128>}, {pipeline_mode = #tpu.pipeline_mode<synchronous>, transform_indices = @transform_5, window_bounds = array<i64: 1, 1>}]} {
    %c0 = arith.constant 0 : index
    %c0_0 = arith.constant 0 : index
    %0 = vector.load %arg1[%c0, %c0_0] : memref<16x16xf32, #tpu.memory_space<vmem>>, vector<16x16xf32>
    %1 = arith.truncf %0 : vector<16x16xf32> to vector<16x16xbf16>
    %cst = arith.constant 0.000000e+00 : f32
    %2 = vector.broadcast %cst : f32 to vector<16x128xf32>
    %cst_1 = arith.constant 0.000000e+00 : f32
    %3 = vector.broadcast %cst_1 : f32 to vector<16x128xf32>
    %cst_2 = arith.constant 0.000000e+00 : f32
    %4 = vector.broadcast %cst_2 : f32 to vector<16x128xf32>
    %c0_3 = arith.constant 0 : index
    %c0_4 = arith.constant 0 : index
    %c0_5 = arith.constant 0 : index
    %5 = vector.load %arg2[%c0_3, %c0_4, %c0_5] : memref<1x16x256xbf16, #tpu.memory_space<vmem>>, vector<1x16x256xbf16>
    %6 = vector.shape_cast %5 : vector<1x16x256xbf16> to vector<16x256xbf16>
    %c0_6 = arith.constant 0 : index
    %c0_7 = arith.constant 0 : index
    %c0_8 = arith.constant 0 : index
    %7 = vector.load %arg4[%c0_6, %c0_7, %c0_8] : memref<1x16x256xbf16, #tpu.memory_space<vmem>>, vector<1x16x256xbf16>
    %8 = vector.shape_cast %7 : vector<1x16x256xbf16> to vector<16x256xbf16>
    %9 = arith.extf %8 : vector<16x256xbf16> to vector<16x256xf32>
    %cst_9 = arith.constant dense<0.000000e+00> : vector<16x256xf32>
    %10 = tpu.matmul %1, %6, %cst_9 {dimension_numbers = #tpu.dot_dimension_numbers<[1], [0], [0], [1], [0, 0, 1, 1], [], []>} : vector<16x16xbf16>, vector<16x256xbf16>, vector<16x256xf32> -> vector<16x256xf32>
    %11 = vector.extract_strided_slice %10 {offsets = [0, 0], sizes = [16, 128], strides = [1, 1]} : vector<16x256xf32> to vector<16x128xf32>
    %12 = vector.extract_strided_slice %10 {offsets = [0, 128], sizes = [16, 128], strides = [1, 1]} : vector<16x256xf32> to vector<16x128xf32>
    %13 = arith.addf %11, %12 : vector<16x128xf32>
    %cst_10 = arith.constant dense<0.000000e+00> : vector<16xf32>
    %14 = vector.multi_reduction <add>, %13, %cst_10 [1] : vector<16x128xf32> to vector<16xf32>
    %15 = vector.shape_cast %14 : vector<16xf32> to vector<16x1xf32>
    %cst_11 = arith.constant 3.906250e-03 : f32
    %16 = vector.broadcast %cst_11 : f32 to vector<16x1xf32>
    %17 = arith.mulf %15, %16 : vector<16x1xf32>
    %18 = vector.broadcast %17 : vector<16x1xf32> to vector<16x256xf32>
    %19 = arith.subf %10, %18 : vector<16x256xf32>
    %20 = arith.mulf %19, %19 : vector<16x256xf32>
    %21 = vector.extract_strided_slice %20 {offsets = [0, 0], sizes = [16, 128], strides = [1, 1]} : vector<16x256xf32> to vector<16x128xf32>
    %22 = vector.extract_strided_slice %20 {offsets = [0, 128], sizes = [16, 128], strides = [1, 1]} : vector<16x256xf32> to vector<16x128xf32>
    %23 = arith.addf %21, %22 : vector<16x128xf32>
    %cst_12 = arith.constant dense<0.000000e+00> : vector<16xf32>
    %24 = vector.multi_reduction <add>, %23, %cst_12 [1] : vector<16x128xf32> to vector<16xf32>
    %25 = vector.shape_cast %24 : vector<16xf32> to vector<16x1xf32>
    %cst_13 = arith.constant 3.906250e-03 : f32
    %26 = vector.broadcast %cst_13 : f32 to vector<16x1xf32>
    %27 = arith.mulf %25, %26 : vector<16x1xf32>
    %cst_14 = arith.constant 0.000000e+00 : f32
    %28 = vector.broadcast %cst_14 : f32 to vector<16x1xf32>
    %29 = arith.maximumf %27, %28 : vector<16x1xf32>
    %cst_15 = arith.constant 9.99999974E-6 : f32
    %30 = vector.broadcast %cst_15 : f32 to vector<16x1xf32>
    %31 = arith.addf %29, %30 : vector<16x1xf32>
    %32 = math.rsqrt %31 : vector<16x1xf32>
    %cst_16 = arith.constant 5.000000e-01 : f32
    %33 = vector.broadcast %cst_16 : f32 to vector<16x1xf32>
    %34 = arith.mulf %32, %33 : vector<16x1xf32>
    %35 = vector.broadcast %34 : vector<16x1xf32> to vector<16x256xf32>
    %36 = arith.mulf %19, %35 : vector<16x256xf32>
    %37 = vector.extract_strided_slice %9 {offsets = [0, 0], sizes = [16, 128], strides = [1, 1]} : vector<16x256xf32> to vector<16x128xf32>
    %38 = vector.extract_strided_slice %9 {offsets = [0, 128], sizes = [16, 128], strides = [1, 1]} : vector<16x256xf32> to vector<16x128xf32>
    %39 = arith.addf %37, %38 : vector<16x128xf32>
    %cst_17 = arith.constant dense<0.000000e+00> : vector<16xf32>
    %40 = vector.multi_reduction <add>, %39, %cst_17 [1] : vector<16x128xf32> to vector<16xf32>
    %41 = vector.shape_cast %40 : vector<16xf32> to vector<16x1xf32>
    %cst_18 = arith.constant 3.906250e-03 : f32
    %42 = vector.broadcast %cst_18 : f32 to vector<16x1xf32>
    %43 = arith.mulf %41, %42 : vector<16x1xf32>
    %44 = vector.broadcast %43 : vector<16x1xf32> to vector<16x256xf32>
    %45 = arith.subf %9, %44 : vector<16x256xf32>
    %46 = arith.mulf %45, %45 : vector<16x256xf32>
    %47 = vector.extract_strided_slice %46 {offsets = [0, 0], sizes = [16, 128], strides = [1, 1]} : vector<16x256xf32> to vector<16x128xf32>
    %48 = vector.extract_strided_slice %46 {offsets = [0, 128], sizes = [16, 128], strides = [1, 1]} : vector<16x256xf32> to vector<16x128xf32>
    %49 = arith.addf %47, %48 : vector<16x128xf32>
    %cst_19 = arith.constant dense<0.000000e+00> : vector<16xf32>
    %50 = vector.multi_reduction <add>, %49, %cst_19 [1] : vector<16x128xf32> to vector<16xf32>
    %51 = vector.shape_cast %50 : vector<16xf32> to vector<16x1xf32>
    %cst_20 = arith.constant 3.906250e-03 : f32
    %52 = vector.broadcast %cst_20 : f32 to vector<16x1xf32>
    %53 = arith.mulf %51, %52 : vector<16x1xf32>
    %cst_21 = arith.constant 0.000000e+00 : f32
    %54 = vector.broadcast %cst_21 : f32 to vector<16x1xf32>
    %55 = arith.maximumf %53, %54 : vector<16x1xf32>
    %cst_22 = arith.constant 9.99999974E-6 : f32
    %56 = vector.broadcast %cst_22 : f32 to vector<16x1xf32>
    %57 = arith.addf %55, %56 : vector<16x1xf32>
    %58 = math.rsqrt %57 : vector<16x1xf32>
    %cst_23 = arith.constant 5.000000e-01 : f32
    %59 = vector.broadcast %cst_23 : f32 to vector<16x1xf32>
    %60 = arith.mulf %58, %59 : vector<16x1xf32>
    %61 = vector.broadcast %60 : vector<16x1xf32> to vector<16x256xf32>
    %62 = arith.mulf %45, %61 : vector<16x256xf32>
    %63 = vector.extract_strided_slice %36 {offsets = [0, 0], sizes = [16, 128], strides = [1, 1]} : vector<16x256xf32> to vector<16x128xf32>
    %64 = vector.extract_strided_slice %36 {offsets = [0, 128], sizes = [16, 128], strides = [1, 1]} : vector<16x256xf32> to vector<16x128xf32>
    %65 = arith.maximumf %63, %64 : vector<16x128xf32>
    %cst_24 = arith.constant dense<0xFF800000> : vector<16xf32>
    %66 = vector.multi_reduction <maximumf>, %65, %cst_24 [1] : vector<16x128xf32> to vector<16xf32>
    %67 = vector.shape_cast %66 : vector<16xf32> to vector<16x1xf32>
    %cst_25 = arith.constant dense<0xFF800000> : vector<1xf32>
    %68 = vector.multi_reduction <maximumf>, %67, %cst_25 [0] : vector<16x1xf32> to vector<1xf32>
    %69 = vector.shape_cast %68 : vector<1xf32> to vector<1x1xf32>
    %70 = vector.extract_strided_slice %62 {offsets = [0, 0], sizes = [16, 128], strides = [1, 1]} : vector<16x256xf32> to vector<16x128xf32>
    %71 = vector.extract_strided_slice %62 {offsets = [0, 128], sizes = [16, 128], strides = [1, 1]} : vector<16x256xf32> to vector<16x128xf32>
    %72 = arith.maximumf %70, %71 : vector<16x128xf32>
    %cst_26 = arith.constant dense<0xFF800000> : vector<16xf32>
    %73 = vector.multi_reduction <maximumf>, %72, %cst_26 [1] : vector<16x128xf32> to vector<16xf32>
    %74 = vector.shape_cast %73 : vector<16xf32> to vector<16x1xf32>
    %cst_27 = arith.constant dense<0xFF800000> : vector<1xf32>
    %75 = vector.multi_reduction <maximumf>, %74, %cst_27 [0] : vector<16x1xf32> to vector<1xf32>
    %76 = vector.shape_cast %75 : vector<1xf32> to vector<1x1xf32>
    %77 = vector.broadcast %69 : vector<1x1xf32> to vector<16x256xf32>
    %78 = arith.subf %36, %77 : vector<16x256xf32>
    %79 = math.exp %78 : vector<16x256xf32>
    %80 = vector.broadcast %76 : vector<1x1xf32> to vector<16x256xf32>
    %81 = arith.subf %62, %80 : vector<16x256xf32>
    %82 = math.exp %81 : vector<16x256xf32>
    %83 = vector.extract_strided_slice %79 {offsets = [0, 0], sizes = [16, 128], strides = [1, 1]} : vector<16x256xf32> to vector<16x128xf32>
    %84 = arith.addf %2, %83 : vector<16x128xf32>
    %85 = vector.extract_strided_slice %79 {offsets = [0, 128], sizes = [16, 128], strides = [1, 1]} : vector<16x256xf32> to vector<16x128xf32>
    %86 = arith.addf %84, %85 : vector<16x128xf32>
    %87 = vector.extract_strided_slice %82 {offsets = [0, 0], sizes = [16, 128], strides = [1, 1]} : vector<16x256xf32> to vector<16x128xf32>
    %88 = arith.addf %3, %87 : vector<16x128xf32>
    %89 = vector.extract_strided_slice %82 {offsets = [0, 128], sizes = [16, 128], strides = [1, 1]} : vector<16x256xf32> to vector<16x128xf32>
    %90 = arith.addf %88, %89 : vector<16x128xf32>
    %91 = arith.subf %62, %36 : vector<16x256xf32>
    %92 = arith.mulf %82, %91 : vector<16x256xf32>
    %93 = vector.extract_strided_slice %92 {offsets = [0, 0], sizes = [16, 128], strides = [1, 1]} : vector<16x256xf32> to vector<16x128xf32>
    %94 = arith.addf %4, %93 : vector<16x128xf32>
    %95 = vector.extract_strided_slice %92 {offsets = [0, 128], sizes = [16, 128], strides = [1, 1]} : vector<16x256xf32> to vector<16x128xf32>
    %96 = arith.addf %94, %95 : vector<16x128xf32>
    %c0_28 = arith.constant 0 : index
    %c0_29 = arith.constant 0 : index
    %c0_30 = arith.constant 0 : index
    %97 = vector.load %arg3[%c0_28, %c0_29, %c0_30] : memref<1x16x128xbf16, #tpu.memory_space<vmem>>, vector<1x16x128xbf16>
    %98 = vector.shape_cast %97 : vector<1x16x128xbf16> to vector<16x128xbf16>
    %c0_31 = arith.constant 0 : index
    %c0_32 = arith.constant 0 : index
    %c0_33 = arith.constant 0 : index
    %99 = vector.load %arg5[%c0_31, %c0_32, %c0_33] : memref<1x16x128xbf16, #tpu.memory_space<vmem>>, vector<1x16x128xbf16>
    %100 = vector.shape_cast %99 : vector<1x16x128xbf16> to vector<16x128xbf16>
    %101 = arith.extf %100 : vector<16x128xbf16> to vector<16x128xf32>
    %102 = tpu.iota {dimensions = array<i32: 1>} : vector<16x128xi32>
    %c64_i32 = arith.constant 64 : i32
    %103 = vector.broadcast %c64_i32 : i32 to vector<16x128xi32>
    %104 = arith.cmpi slt, %102, %103 : vector<16x128xi32>
    %cst_34 = arith.constant dense<0.000000e+00> : vector<16x128xf32>
    %105 = tpu.matmul %1, %98, %cst_34 {dimension_numbers = #tpu.dot_dimension_numbers<[1], [0], [0], [1], [0, 0, 1, 1], [], []>} : vector<16x16xbf16>, vector<16x128xbf16>, vector<16x128xf32> -> vector<16x128xf32>
    %cst_35 = arith.constant dense<0.000000e+00> : vector<16xf32>
    %106 = vector.multi_reduction <add>, %105, %cst_35 [1] : vector<16x128xf32> to vector<16xf32>
    %107 = vector.shape_cast %106 : vector<16xf32> to vector<16x1xf32>
    %cst_36 = arith.constant 1.562500e-02 : f32
    %108 = vector.broadcast %cst_36 : f32 to vector<16x1xf32>
    %109 = arith.mulf %107, %108 : vector<16x1xf32>
    %110 = vector.broadcast %109 : vector<16x1xf32> to vector<16x128xf32>
    %111 = arith.subf %105, %110 : vector<16x128xf32>
    %cst_37 = arith.constant 0.000000e+00 : f32
    %112 = vector.broadcast %cst_37 : f32 to vector<16x128xf32>
    %113 = arith.select %104, %111, %112 : vector<16x128xi1>, vector<16x128xf32>
    %114 = arith.mulf %113, %113 : vector<16x128xf32>
    %cst_38 = arith.constant dense<0.000000e+00> : vector<16xf32>
    %115 = vector.multi_reduction <add>, %114, %cst_38 [1] : vector<16x128xf32> to vector<16xf32>
    %116 = vector.shape_cast %115 : vector<16xf32> to vector<16x1xf32>
    %cst_39 = arith.constant 1.562500e-02 : f32
    %117 = vector.broadcast %cst_39 : f32 to vector<16x1xf32>
    %118 = arith.mulf %116, %117 : vector<16x1xf32>
    %cst_40 = arith.constant 0.000000e+00 : f32
    %119 = vector.broadcast %cst_40 : f32 to vector<16x1xf32>
    %120 = arith.maximumf %118, %119 : vector<16x1xf32>
    %cst_41 = arith.constant 9.99999974E-6 : f32
    %121 = vector.broadcast %cst_41 : f32 to vector<16x1xf32>
    %122 = arith.addf %120, %121 : vector<16x1xf32>
    %123 = math.rsqrt %122 : vector<16x1xf32>
    %cst_42 = arith.constant 5.000000e-01 : f32
    %124 = vector.broadcast %cst_42 : f32 to vector<16x1xf32>
    %125 = arith.mulf %123, %124 : vector<16x1xf32>
    %126 = vector.broadcast %125 : vector<16x1xf32> to vector<16x128xf32>
    %127 = arith.mulf %113, %126 : vector<16x128xf32>
    %cst_43 = arith.constant dense<0.000000e+00> : vector<16xf32>
    %128 = vector.multi_reduction <add>, %101, %cst_43 [1] : vector<16x128xf32> to vector<16xf32>
    %129 = vector.shape_cast %128 : vector<16xf32> to vector<16x1xf32>
    %cst_44 = arith.constant 1.562500e-02 : f32
    %130 = vector.broadcast %cst_44 : f32 to vector<16x1xf32>
    %131 = arith.mulf %129, %130 : vector<16x1xf32>
    %132 = vector.broadcast %131 : vector<16x1xf32> to vector<16x128xf32>
    %133 = arith.subf %101, %132 : vector<16x128xf32>
    %cst_45 = arith.constant 0.000000e+00 : f32
    %134 = vector.broadcast %cst_45 : f32 to vector<16x128xf32>
    %135 = arith.select %104, %133, %134 : vector<16x128xi1>, vector<16x128xf32>
    %136 = arith.mulf %135, %135 : vector<16x128xf32>
    %cst_46 = arith.constant dense<0.000000e+00> : vector<16xf32>
    %137 = vector.multi_reduction <add>, %136, %cst_46 [1] : vector<16x128xf32> to vector<16xf32>
    %138 = vector.shape_cast %137 : vector<16xf32> to vector<16x1xf32>
    %cst_47 = arith.constant 1.562500e-02 : f32
    %139 = vector.broadcast %cst_47 : f32 to vector<16x1xf32>
    %140 = arith.mulf %138, %139 : vector<16x1xf32>
    %cst_48 = arith.constant 0.000000e+00 : f32
    %141 = vector.broadcast %cst_48 : f32 to vector<16x1xf32>
    %142 = arith.maximumf %140, %141 : vector<16x1xf32>
    %cst_49 = arith.constant 9.99999974E-6 : f32
    %143 = vector.broadcast %cst_49 : f32 to vector<16x1xf32>
    %144 = arith.addf %142, %143 : vector<16x1xf32>
    %145 = math.rsqrt %144 : vector<16x1xf32>
    %cst_50 = arith.constant 5.000000e-01 : f32
    %146 = vector.broadcast %cst_50 : f32 to vector<16x1xf32>
    %147 = arith.mulf %145, %146 : vector<16x1xf32>
    %148 = vector.broadcast %147 : vector<16x1xf32> to vector<16x128xf32>
    %149 = arith.mulf %135, %148 : vector<16x128xf32>
    %cst_51 = arith.constant -1.000000e+30 : f32
    %150 = vector.broadcast %cst_51 : f32 to vector<16x128xf32>
    %151 = arith.select %104, %127, %150 : vector<16x128xi1>, vector<16x128xf32>
    %cst_52 = arith.constant dense<0xFF800000> : vector<16xf32>
    %152 = vector.multi_reduction <maximumf>, %151, %cst_52 [1] : vector<16x128xf32> to vector<16xf32>
    %153 = vector.shape_cast %152 : vector<16xf32> to vector<16x1xf32>
    %cst_53 = arith.constant dense<0xFF800000> : vector<1xf32>
    %154 = vector.multi_reduction <maximumf>, %153, %cst_53 [0] : vector<16x1xf32> to vector<1xf32>
    %155 = vector.shape_cast %154 : vector<1xf32> to vector<1x1xf32>
    %cst_54 = arith.constant -1.000000e+30 : f32
    %156 = vector.broadcast %cst_54 : f32 to vector<16x128xf32>
    %157 = arith.select %104, %149, %156 : vector<16x128xi1>, vector<16x128xf32>
    %cst_55 = arith.constant dense<0xFF800000> : vector<16xf32>
    %158 = vector.multi_reduction <maximumf>, %157, %cst_55 [1] : vector<16x128xf32> to vector<16xf32>
    %159 = vector.shape_cast %158 : vector<16xf32> to vector<16x1xf32>
    %cst_56 = arith.constant dense<0xFF800000> : vector<1xf32>
    %160 = vector.multi_reduction <maximumf>, %159, %cst_56 [0] : vector<16x1xf32> to vector<1xf32>
    %161 = vector.shape_cast %160 : vector<1xf32> to vector<1x1xf32>
    %162 = arith.maximumf %69, %155 : vector<1x1xf32>
    %163 = arith.maximumf %76, %161 : vector<1x1xf32>
    %164 = arith.subf %69, %162 : vector<1x1xf32>
    %165 = math.exp %164 : vector<1x1xf32>
    %166 = vector.broadcast %165 : vector<1x1xf32> to vector<16x128xf32>
    %167 = arith.mulf %86, %166 : vector<16x128xf32>
    %168 = arith.subf %76, %163 : vector<1x1xf32>
    %169 = math.exp %168 : vector<1x1xf32>
    %170 = vector.broadcast %169 : vector<1x1xf32> to vector<16x128xf32>
    %171 = arith.mulf %90, %170 : vector<16x128xf32>
    %172 = vector.broadcast %169 : vector<1x1xf32> to vector<16x128xf32>
    %173 = arith.mulf %96, %172 : vector<16x128xf32>
    %174 = vector.broadcast %162 : vector<1x1xf32> to vector<16x128xf32>
    %175 = arith.subf %127, %174 : vector<16x128xf32>
    %176 = math.exp %175 : vector<16x128xf32>
    %177 = vector.broadcast %163 : vector<1x1xf32> to vector<16x128xf32>
    %178 = arith.subf %149, %177 : vector<16x128xf32>
    %179 = math.exp %178 : vector<16x128xf32>
    %cst_57 = arith.constant 0.000000e+00 : f32
    %180 = vector.broadcast %cst_57 : f32 to vector<16x128xf32>
    %181 = arith.select %104, %176, %180 : vector<16x128xi1>, vector<16x128xf32>
    %cst_58 = arith.constant 0.000000e+00 : f32
    %182 = vector.broadcast %cst_58 : f32 to vector<16x128xf32>
    %183 = arith.select %104, %179, %182 : vector<16x128xi1>, vector<16x128xf32>
    %184 = arith.addf %167, %181 : vector<16x128xf32>
    %185 = arith.addf %171, %183 : vector<16x128xf32>
    %186 = arith.subf %149, %127 : vector<16x128xf32>
    %187 = arith.mulf %183, %186 : vector<16x128xf32>
    %188 = arith.addf %173, %187 : vector<16x128xf32>
    %cst_59 = arith.constant dense<0.000000e+00> : vector<16xf32>
    %189 = vector.multi_reduction <add>, %184, %cst_59 [1] : vector<16x128xf32> to vector<16xf32>
    %190 = vector.shape_cast %189 : vector<16xf32> to vector<16x1xf32>
    %cst_60 = arith.constant dense<0.000000e+00> : vector<1xf32>
    %191 = vector.multi_reduction <add>, %190, %cst_60 [0] : vector<16x1xf32> to vector<1xf32>
    %192 = vector.shape_cast %191 : vector<1xf32> to vector<1x1xf32>
    %cst_61 = arith.constant dense<0.000000e+00> : vector<16xf32>
    %193 = vector.multi_reduction <add>, %185, %cst_61 [1] : vector<16x128xf32> to vector<16xf32>
    %194 = vector.shape_cast %193 : vector<16xf32> to vector<16x1xf32>
    %cst_62 = arith.constant dense<0.000000e+00> : vector<1xf32>
    %195 = vector.multi_reduction <add>, %194, %cst_62 [0] : vector<16x1xf32> to vector<1xf32>
    %196 = vector.shape_cast %195 : vector<1xf32> to vector<1x1xf32>
    %cst_63 = arith.constant dense<0.000000e+00> : vector<16xf32>
    %197 = vector.multi_reduction <add>, %188, %cst_63 [1] : vector<16x128xf32> to vector<16xf32>
    %198 = vector.shape_cast %197 : vector<16xf32> to vector<16x1xf32>
    %cst_64 = arith.constant dense<0.000000e+00> : vector<1xf32>
    %199 = vector.multi_reduction <add>, %198, %cst_64 [0] : vector<16x1xf32> to vector<1xf32>
    %200 = vector.shape_cast %199 : vector<1xf32> to vector<1x1xf32>
    %201 = math.log %192 : vector<1x1xf32>
    %202 = arith.addf %162, %201 : vector<1x1xf32>
    %203 = math.log %196 : vector<1x1xf32>
    %204 = arith.addf %163, %203 : vector<1x1xf32>
    %205 = arith.divf %200, %196 : vector<1x1xf32>
    %206 = arith.addf %205, %202 : vector<1x1xf32>
    %207 = arith.subf %206, %204 : vector<1x1xf32>
    %cst_65 = arith.constant 3.906250e-04 : f32
    %208 = vector.broadcast %cst_65 : f32 to vector<1x1xf32>
    %209 = arith.mulf %208, %207 : vector<1x1xf32>
    %c0_66 = arith.constant 0 : index
    %c0_67 = arith.constant 0 : index
    %210 = vector.load %arg6[%c0_66, %c0_67] : memref<1x1xf32, #tpu.memory_space<vmem>>, vector<1x1xf32>
    tpu.vector_store %arg6[%c0_66, %c0_67], %209 {strides = array<i32>} : memref<1x1xf32, #tpu.memory_space<vmem>>, vector<1x1xf32>,
    return
  }
  func.func @transform_0(%arg0: i32) -> (i32, i32) {
    %c0_i32 = arith.constant 0 : i32
    %c0_i32_0 = arith.constant 0 : i32
    %c0_i32_1 = arith.constant 0 : i32
    return %c0_i32, %c0_i32_0 : i32, i32
  }
  func.func @transform_1(%arg0: i32) -> (i32, i32, i32) {
    %c0_i32 = arith.constant 0 : i32
    %c0_i32_0 = arith.constant 0 : i32
    %c0_i32_1 = arith.constant 0 : i32
    %c0_i32_2 = arith.constant 0 : i32
    return %c0_i32, %c0_i32_0, %c0_i32_1 : i32, i32, i32
  }
  func.func @transform_2(%arg0: i32) -> (i32, i32, i32) {
    %c0_i32 = arith.constant 0 : i32
    %c0_i32_0 = arith.constant 0 : i32
    %c0_i32_1 = arith.constant 0 : i32
    %c0_i32_2 = arith.constant 0 : i32
    return %c0_i32, %c0_i32_0, %c0_i32_1 : i32, i32, i32
  }
  func.func @transform_3(%arg0: i32) -> (i32, i32, i32) {
    %c0_i32 = arith.constant 0 : i32
    %c0_i32_0 = arith.constant 0 : i32
    %c0_i32_1 = arith.constant 0 : i32
    %c0_i32_2 = arith.constant 0 : i32
    return %c0_i32, %c0_i32_0, %c0_i32_1 : i32, i32, i32
  }
  func.func @transform_4(%arg0: i32) -> (i32, i32, i32) {
    %c0_i32 = arith.constant 0 : i32
    %c0_i32_0 = arith.constant 0 : i32
    %c0_i32_1 = arith.constant 0 : i32
    %c0_i32_2 = arith.constant 0 : i32
    return %c0_i32, %c0_i32_0, %c0_i32_1 : i32, i32, i32
  }
  func.func @transform_5(%arg0: i32) -> (i32, i32) {
    %c0_i32 = arith.constant 0 : i32
    %c0_i32_0 = arith.constant 0 : i32
    %c0_i32_1 = arith.constant 0 : i32
    return %c0_i32, %c0_i32_0 : i32, i32
  }
}

</mosaic_0001>

<bundles_post_ra>
// kernel: tpu_custom_call.1
= control target key start
LH: loop header
LB: loop body
LE: loop exit
PB: predicated region body
PF: predicated region fallthrough
CT: control target
= control target key end

     0   :  { %10 = vsyncpa [#allocation3], 0  ;;  %s1050_s0 = inlined_call_operand.hbm [shape: f32[16,16], index: 0, kind: input, shape index: {}]   ;;  %s1051_s1 = inlined_call_operand.hbm [shape: bf16[2,16,256], index: 1, kind: input, shape index: {}]   ;;  %s1052_s2 = inlined_call_operand.hbm [shape: bf16[2,16,128], index: 2, kind: input, shape index: {}]   ;;  %s1053_s3 = inlined_call_operand.hbm [shape: bf16[2,16,256], index: 3, kind: input, shape index: {}]   ;;  %s1054_s4 = inlined_call_operand.hbm [shape: bf16[2,16,128], index: 4, kind: input, shape index: {}]   ;;  %s1055_s5 = inlined_call_operand.hbm [shape: f32[1,1], index: 5, kind: output, shape index: {}]  }
   0x1   :  { %11 = vsyncpa [#allocation6], 0 }
   0x2   :  { %12 = vsyncpa [#allocation9], 0 }
   0x3   :  { %13 = vsyncpa [#allocation4], 0  ;;  %s31_s20 = sshll.u32 %s1051_s1, 4  ;;  %s830_s21 = smov [#allocation5]   ;;  %s32_s20 = int_to_ptr.hbm [resolvable:$true] %s31_s20 }
   0x4   :  { %s33_s22 = sshll.u32 %s830_s21, 4  ;;  %s57_s25 = sshll.u32 %s1053_s3, 4  ;;  %s34_s22 = int_to_ptr.vmem [resolvable:$true] %s33_s22  ;;  %s58_s25 = int_to_ptr.hbm [resolvable:$true] %s57_s25 }
   0x5   :  { %s831_s26 = smov 128   ;;  %s832_s27 = smov 8  }
   0x6   :  { %39 = dma.hbm_to_vmem [thread:$0]  %s32_s20, 256, %s34_s22, [#allocation6], %s831_s26, %s831_s26, %s832_s27  }
   0x7   :  { %s833_s28 = smov [#allocation8]   ;;  %s18_s7 = sshll.u32 %s1050_s0, 4  ;;  %s19_s7 = int_to_ptr.hbm [resolvable:$true] %s18_s7 }
   0x8   :  { %s59_s29 = sshll.u32 %s833_s28, 4  ;;  %s44_s9 = sshll.u32 %s1052_s2, 4  ;;  %s60_s29 = int_to_ptr.vmem [resolvable:$true] %s59_s29  ;;  %s45_s9 = int_to_ptr.hbm [resolvable:$true] %s44_s9 }
   0x9   :  { %65 = dma.hbm_to_vmem [thread:$0]  %s58_s25, 256, %s60_s29, [#allocation9], %s831_s26, %s831_s26, %s832_s27  }
   0xa   :  { %s834_s10 = smov [#allocation2]   ;;  %s835_s3 = smov [#allocation7]  }
   0xb   :  { %s20_s11 = sshll.u32 %s834_s10, 4  ;;  %s46_s12 = sshll.u32 %s835_s3, 4  ;;  %s21_s11 = int_to_ptr.vmem [resolvable:$true] %s20_s11  ;;  %s47_s12 = int_to_ptr.vmem [resolvable:$true] %s46_s12 }
   0xc   :  { %26 = dma.hbm_to_vmem [thread:$0]  %s19_s7, 256, %s21_s11, [#allocation3], %s831_s26, %s831_s26, %s832_s27  }
   0xd   :  { %s836_s13 = smov 64   ;;  %s837_s14 = smov 4  }
   0xe   :  { %52 = dma.hbm_to_vmem [thread:$0]  %s45_s9, 128, %s47_s12, [#allocation6], %s836_s13, %s836_s13, %s837_s14  }
   0xf   :  { %s70_s16 = sshll.u32 %s1054_s4, 4  ;;  %s838_s17 = smov [#allocation10]   ;;  %s71_s16 = int_to_ptr.hbm [resolvable:$true] %s70_s16 }
  0x10   :  { %s72_s18 = sshll.u32 %s838_s17, 4  ;;  %s73_s18 = int_to_ptr.vmem [resolvable:$true] %s72_s18 }
  0x11   :  { %78 = dma.hbm_to_vmem [thread:$0]  %s71_s16, 128, %s73_s18, [#allocation9], %s836_s13, %s836_s13, %s837_s14  }
  0x12   :  { %822 = dma.done.wait [#allocation3], 256  }
  0x13   :  { %823 = vsyncadd [#allocation3], 4294967040 }
  0x14   :  { %824 = dma.done.wait [#allocation6], 384  }
  0x15   :  { %825 = vsyncadd [#allocation6], 4294966912 }
  0x16   :  { %826 = dma.done.wait [#allocation9], 384  }
  0x17   :  { %827 = vsyncadd [#allocation9], 4294966912  ;;  %v598_v0 = vld [vmem:[#allocation5] sm:$0xf]  ;;  %v612_v1 = vld [vmem:[#allocation5 + $0x4] sm:$0xf0]  ;;  %v337_v31 = vlaneseq }
  0x18   :  { %v611_v2 = vld [vmem:[#allocation5 + $0x4] sm:$0xf]  ;;  %v599_v3 = vor.u32 %v612_v1, %v598_v0  ;;  %v600_v4 = vld [vmem:[#allocation5 + $0x8] sm:$0xf0]  ;;  %v613_v5 = vld [vmem:[#allocation7] sm:$0xff]  ;;  %vm121_vm0 = vcmask 130048  }
  0x19   :  { %v100_v6 = vld [vmem:[#allocation2] sm:$0xff]  ;;  %v603_v7 = vor.u32 %v611_v2, %v600_v4  ;;  %v101_v8 = vld [vmem:[#allocation2 + $0x8] sm:$0xff]  ;;  %353 = vmatpush.bf16.msra.mxu2 %v613_v5  ;;  %v615_v13 = vld [vmem:[#allocation10] sm:$0xff]   ;;  %v897_v40 = vand.u32 127, %v337_v31  ;;  %s839_s2 = smov [#allocation11]   ;;  %s584_s21 = sshll.u32 %s1055_s5, 4  ;;  %s585_s21 = int_to_ptr.hbm [resolvable:$true] %s584_s21 }
  0x1a   :  { %v105_v9 = vld [vmem:[#allocation8] sm:$0xff]  ;;  %132 = vmatpush.bf16.msra.mxu0 %v599_v3  ;;  %v102_v10 = vpack.c.bf16 %v101_v8, %v100_v6  ;;  %v106_v14 = vld [vmem:[#allocation8 + $0x8] sm:$0xff]  ;;  %v616_v15 = vunpack.c.l.bf16 %v615_v13  ;;  %v617_v20 = vunpack.c.h.bf16 %v615_v13  ;;  %s582_s4 = sshll.u32 %s839_s2, 4  ;;  %s583_s4 = int_to_ptr.vmem [resolvable:$true] %s582_s4 }
  0x1b   :  { %v107_v11 = vunpack.c.l.bf16 %v105_v9  ;;  %v108_v12 = vunpack.c.h.bf16 %v105_v9  ;;  %146 = vmatpush.bf16.msra.mxu1 %v603_v7  ;;  %v109_v17 = vunpack.c.l.bf16 %v106_v14  ;;  %v110_v18 = vunpack.c.h.bf16 %v106_v14 }
  0x1c   :  { %610 = vmatmul.msk.bf16.vlgmr.msra.gmra.mxu2 %vm121_vm0, %v102_v10  ;;  %406 = vadd.xlane.f32.xlu1 %v616_v15  ;;  %vm339_vm1 = vcmp.lt.s32.totalorder %v897_v40, 64 }
  0x1d   :  { %v207_v16 = vadd.f32 %v108_v12, %v107_v11  ;;  %604 = vmatmul.msk.bf16.vlgmr.msra.gmra.mxu0 %vm121_vm0, %v102_v10  ;;  %v208_v19 = vadd.f32 %v110_v18, %v109_v17 }
  0x1e   :  { %605 = vmatmul.msk.bf16.vlgmr.msra.gmra.mxu1 %vm121_vm0, %v102_v10 }
  0x1f   :  { %209 = vadd.xlane.f32.xlu0 %v207_v16 }
  0x24   :  { %408 = vadd.xlane.f32.xlu1 %v617_v20 }
  0x27   :  { %211 = vadd.xlane.f32.xlu0 %v208_v19 }
  0x8f   :  { %v407_v25 = vpop.xlane.xlu1 %406 }
  0x90   :  { %v410_v38 = vmul.f32 0.015625, %v407_v25 }
  0x92   :  { %v210_v21 = vpop.xlane.xlu0 %209  ;;  %v412_v44 = vsub.f32 %v616_v15, %v410_v38 }
  0x93   :  { %v213_v30 = vmul.f32 0.00390625, %v210_v21 }
  0x94   :  { %v906_v50 = vsel %vm339_vm1, %v412_v44, 0.0 }
  0x95   :  { %v893_v35 = vsub.f32 %v107_v11, %v213_v30  ;;  %v895_v36 = vsub.f32 %v108_v12, %v213_v30  ;;  %v416_v52 = vmul.f32 %v906_v50, %v906_v50 }
  0x97   :  { %v409_v42 = vpop.xlane.xlu1 %408  ;;  %v219_v45 = vmul.f32 %v893_v35, %v893_v35  ;;  %v220_v46 = vmul.f32 %v895_v36, %v895_v36 }
  0x98   :  { %v411_v47 = vmul.f32 0.015625, %v409_v42 }
  0x99   :  { %v223_v49 = vadd.f32 %v220_v46, %v219_v45 }
  0x9a   :  { %v212_v22 = vpop.xlane.xlu0 %211  ;;  %v134_v23 = vpop.f32.mrf.mxu0  ;;  %v413_v51 = vsub.f32 %v617_v20, %v411_v47 }
  0x9b   :  { %v214_v24 = vmul.f32 0.00390625, %v212_v22  ;;  %v148_v26 = vpop.f32.mrf.mxu1 }
  0x9c   :  { %v153_v27 = vadd.f32 %v148_v26, %v134_v23  ;;  %v912_v53 = vsel %vm339_vm1, %v413_v51, 0.0 }
  0x9d   :  { %v885_v28 = vsub.f32 %v109_v17, %v214_v24  ;;  %v887_v29 = vsub.f32 %v110_v18, %v214_v24  ;;  %v417_v54 = vmul.f32 %v912_v53, %v912_v53 }
  0x9e   :  { %155 = vadd.xlane.f32.xlu2 %v153_v27 }
  0x9f   :  { %v355_v32 = vpop.f32.mrf.mxu2  ;;  %v221_v33 = vmul.f32 %v885_v28, %v885_v28  ;;  %v222_v34 = vmul.f32 %v887_v29, %v887_v29 }
  0xa0   :  { %360 = vadd.xlane.f32.xlu0 %v355_v32 }
  0xa1   :  { %v224_v43 = vadd.f32 %v222_v34, %v221_v33 }
  0xa2   :  { %v136_v37 = vpop.f32.mrf.mxu0 }
  0xa3   :  { %v150_v39 = vpop.f32.mrf.mxu1 }
  0xa4   :  { %v154_v41 = vadd.f32 %v150_v39, %v136_v37 }
  0xa6   :  { %157 = vadd.xlane.f32.xlu2 %v154_v41 }
  0xa7   :  { %v357_v48 = vpop.f32.mrf.mxu2 }
  0xa8   :  { %227 = vadd.xlane.f32.xlu0 %v224_v43  ;;  %362 = vadd.xlane.f32.xlu1 %v357_v48 }
  0xae   :  { %225 = vadd.xlane.f32.xlu2 %v223_v49 }
  0xb0   :  { %418 = vadd.xlane.f32.xlu1 %v416_v52 }
  0xb6   :  { %420 = vadd.xlane.f32.xlu2 %v417_v54 }
 0x111   :  { %v156_v55 = vpop.xlane.xlu2 %155 }
 0x112   :  { %v159_v56 = vmul.f32 0.00390625, %v156_v55 }
 0x113   :  { %v361_v59 = vpop.xlane.xlu0 %360 }
 0x114   :  { %v916_v57 = vsub.f32 %v134_v23, %v159_v56  ;;  %v918_v58 = vsub.f32 %v148_v26, %v159_v56  ;;  %v364_v60 = vmul.f32 0.015625, %v361_v59 }
 0x116   :  { %v165_v61 = vmul.f32 %v916_v57, %v916_v57  ;;  %v166_v62 = vmul.f32 %v918_v58, %v918_v58  ;;  %v366_v63 = vsub.f32 %v355_v32, %v364_v60 }
 0x118   :  { %v169_v0 = vadd.f32 %v166_v62, %v165_v61  ;;  %v926_v2 = vsel %vm339_vm1, %v366_v63, 0.0 }
 0x119   :  { %v158_v1 = vpop.xlane.xlu2 %157  ;;  %v370_v4 = vmul.f32 %v926_v2, %v926_v2 }
 0x11a   :  { %v160_v3 = vmul.f32 0.00390625, %v158_v1  ;;  %171 = vadd.xlane.f32.xlu0 %v169_v0 }
 0x11b   :  { %v228_v7 = vpop.xlane.xlu0 %227  ;;  %v363_v8 = vpop.xlane.xlu1 %362  ;;  %372 = vadd.xlane.f32.xlu2 %v370_v4 }
 0x11c   :  { %v930_v5 = vsub.f32 %v136_v37, %v160_v3  ;;  %v932_v6 = vsub.f32 %v150_v39, %v160_v3  ;;  %v230_v9 = vmul.f32 0.00390625, %v228_v7  ;;  %v365_v10 = vmul.f32 0.015625, %v363_v8 }
 0x11e   :  { %v167_v11 = vmul.f32 %v930_v5, %v930_v5  ;;  %v168_v12 = vmul.f32 %v932_v6, %v932_v6  ;;  %v232_v13 = vmax.f32 %v230_v9, 0.0  ;;  %v367_v14 = vsub.f32 %v357_v48, %v365_v10 }
 0x120   :  { %v170_v15 = vadd.f32 %v168_v12, %v167_v11  ;;  %v234_v16 = vadd.f32 1e-05, %v232_v13  ;;  %v940_v18 = vsel %vm339_vm1, %v367_v14, 0.0 }
 0x121   :  { %v226_v17 = vpop.xlane.xlu2 %225  ;;  %v371_v20 = vmul.f32 %v940_v18, %v940_v18 }
 0x122   :  { %v229_v19 = vmul.f32 0.00390625, %v226_v17  ;;  %173 = vadd.xlane.f32.xlu1 %v170_v15  ;;  %628 = vrsqrt.f32 %v234_v16  ;;  %vm251_vm2 = vweird.f32 %v234_v16 }
 0x123   :  { %v419_v22 = vpop.xlane.xlu1 %418  ;;  %374 = vadd.xlane.f32.xlu0 %v371_v20 }
 0x124   :  { %v231_v21 = vmax.f32 %v229_v19, 0.0  ;;  %v422_v23 = vmul.f32 0.015625, %v419_v22 }
 0x126   :  { %v233_v24 = vadd.f32 1e-05, %v231_v21  ;;  %v424_v25 = vmax.f32 %v422_v23, 0.0 }
 0x128   :  { %630 = vrsqrt.f32 %v233_v24  ;;  %v629_v26 = vpop.eup %628  ;;  %v426_v27 = vadd.f32 1e-05, %v424_v25  ;;  %vm241_vm10 = vweird.f32 %v233_v24 }
 0x129   :  { %v421_v30 = vpop.xlane.xlu2 %420  ;;  %v246_v31 = vmul.f32 %v629_v26, %v234_v16  ;;  %vm252_vm3 = vweird.f32 %v629_v26 }
 0x12a   :  { %v423_v32 = vmul.f32 0.015625, %v421_v30  ;;  %632 = vrsqrt.f32 %v426_v27  ;;  %vm253_vm4 = vmor %vm251_vm2, %vm252_vm3  ;;  %vm434_vm5 = vweird.f32 %v426_v27 }
 0x12b   :  { %v247_v33 = vmul.f32 %v629_v26, %v246_v31 }
 0x12c   :  { %v425_v34 = vmax.f32 %v423_v32, 0.0 }
 0x12d   :  { %v248_v38 = vmul.f32 0.5, %v247_v33 }
 0x12e   :  { %v631_v37 = vpop.eup %630  ;;  %v427_v39 = vadd.f32 1e-05, %v425_v34 }
 0x12f   :  { %v236_v41 = vmul.f32 %v631_v37, %v233_v24  ;;  %v249_v42 = vsub.f32 1.5, %v248_v38  ;;  %vm242_vm11 = vweird.f32 %v631_v37 }
 0x130   :  { %634 = vrsqrt.f32 %v427_v39  ;;  %v633_v43 = vpop.eup %632  ;;  %vm444_vm8 = vweird.f32 %v427_v39  ;;  %vm243_vm13 = vmor %vm241_vm10, %vm242_vm11 }
 0x131   :  { %v250_v44 = vmul.f32 %v629_v26, %v249_v42  ;;  %v237_v45 = vmul.f32 %v631_v37, %v236_v41  ;;  %v429_v46 = vmul.f32 %v633_v43, %v426_v27  ;;  %vm435_vm6 = vweird.f32 %v633_v43 }
 0x132   :  { %vm436_vm7 = vmor %vm434_vm5, %vm435_vm6 }
 0x133   :  { %v430_v47 = vmul.f32 %v633_v43, %v429_v46  ;;  %v254_v48 = vsel %vm253_vm4, %v629_v26, %v250_v44  ;;  %v238_v52 = vmul.f32 0.5, %v237_v45 }
 0x134   :  { %v256_v49 = vmul.f32 0.5, %v254_v48 }
 0x135   :  { %v431_v54 = vmul.f32 0.5, %v430_v47  ;;  %v239_v62 = vsub.f32 1.5, %v238_v52 }
 0x136   :  { %v635_v51 = vpop.eup %634  ;;  %v945_v56 = vmul.f32 %v256_v49, %v885_v28  ;;  %v948_v60 = vmul.f32 %v256_v49, %v887_v29 }
 0x137   :  { %v439_v55 = vmul.f32 %v635_v51, %v427_v39  ;;  %v432_v59 = vsub.f32 1.5, %v431_v54  ;;  %vm445_vm9 = vweird.f32 %v635_v51  ;;  %v240_v7 = vmul.f32 %v631_v37, %v239_v62 }
 0x138   :  { %v275_v0 = vmax.f32 %v945_v56, %v948_v60  ;;  %vm446_vm12 = vmor %vm444_vm8, %vm445_vm9 }
 0x139   :  { %v440_v61 = vmul.f32 %v635_v51, %v439_v55  ;;  %v433_v63 = vmul.f32 %v633_v43, %v432_v59  ;;  %v244_v12 = vsel %vm243_vm13, %v631_v37, %v240_v7 }
 0x13a   :  { %278 = vmax.xlane.f32.xlu2 %v275_v0  ;;  %v255_v14 = vmul.f32 0.5, %v244_v12 }
 0x13b   :  { %v441_v1 = vmul.f32 0.5, %v440_v61  ;;  %v437_v3 = vsel %vm436_vm7, %v633_v43, %v433_v63 }
 0x13c   :  { %v448_v4 = vmul.f32 0.5, %v437_v3  ;;  %v968_v16 = vmul.f32 %v255_v14, %v895_v36 }
 0x13d   :  { %v442_v28 = vsub.f32 1.5, %v441_v1 }
 0x13e   :  { %v953_v8 = vmul.f32 %v448_v4, %v906_v50  ;;  %v965_v50 = vmul.f32 %v255_v14, %v893_v35 }
 0x13f   :  { %v443_v29 = vmul.f32 %v635_v51, %v442_v28 }
 0x140   :  { %v465_v9 = vsel %vm339_vm1, %v953_v8, -1e+30  ;;  %v274_v17 = vmax.f32 %v965_v50, %v968_v16 }
 0x141   :  { %v447_v10 = vsel %vm446_vm12, %v635_v51, %v443_v29  ;;  %467 = vmax.xlane.f32.xlu0 %v465_v9 }
 0x142   :  { %v449_v11 = vmul.f32 0.5, %v447_v10 }
 0x144   :  { %v959_v13 = vmul.f32 %v449_v11, %v912_v53 }
 0x146   :  { %v466_v15 = vsel %vm339_vm1, %v959_v13, -1e+30 }
 0x147   :  { %469 = vmax.xlane.f32.xlu1 %v466_v15 }
 0x14f   :  { %276 = vmax.xlane.f32.xlu1 %v274_v17 }
 0x18d   :  { %v172_v19 = vpop.xlane.xlu0 %171 }
 0x18e   :  { %v175_v20 = vmul.f32 0.00390625, %v172_v19  ;;  %v373_v53 = vpop.xlane.xlu2 %372 }
 0x18f   :  { %v376_v22 = vmul.f32 0.015625, %v373_v53 }
 0x190   :  { %v177_v21 = vmax.f32 %v175_v20, 0.0 }
 0x191   :  { %v378_v24 = vmax.f32 %v376_v22, 0.0 }
 0x192   :  { %v179_v23 = vadd.f32 1e-05, %v177_v21 }
 0x193   :  { %v380_v25 = vadd.f32 1e-05, %v378_v24 }
 0x194   :  { %636 = vrsqrt.f32 %v179_v23  ;;  %vm187_vm0 = vweird.f32 %v179_v23 }
 0x195   :  { %v174_v26 = vpop.xlane.xlu1 %173  ;;  %638 = vrsqrt.f32 %v380_v25  ;;  %vm388_vm3 = vweird.f32 %v380_v25 }
 0x196   :  { %v176_v35 = vmul.f32 0.00390625, %v174_v26  ;;  %v375_v27 = vpop.xlane.xlu0 %374 }
 0x197   :  { %v377_v36 = vmul.f32 0.015625, %v375_v27 }
 0x198   :  { %v178_v30 = vmax.f32 %v176_v35, 0.0 }
 0x199   :  { %v379_v33 = vmax.f32 %v377_v36, 0.0 }
 0x19a   :  { %v637_v31 = vpop.eup %636  ;;  %v180_v32 = vadd.f32 1e-05, %v178_v30 }
 0x19b   :  { %v182_v34 = vmul.f32 %v637_v31, %v179_v23  ;;  %v639_v37 = vpop.eup %638  ;;  %v381_v38 = vadd.f32 1e-05, %v379_v33  ;;  %vm188_vm14 = vweird.f32 %v637_v31 }
 0x19c   :  { %640 = vrsqrt.f32 %v180_v32  ;;  %v383_v41 = vmul.f32 %v639_v37, %v380_v25  ;;  %vm389_vm15 = vweird.f32 %v639_v37  ;;  %vm189_vm2 = vmor %vm187_vm0, %vm188_vm14  ;;  %vm197_vm6 = vweird.f32 %v180_v32 }
 0x19d   :  { %v183_v39 = vmul.f32 %v637_v31, %v182_v34  ;;  %642 = vrsqrt.f32 %v381_v38  ;;  %vm390_vm4 = vmor %vm388_vm3, %vm389_vm15  ;;  %vm398_vm9 = vweird.f32 %v381_v38  ;;  %vm575_vm14 = vcmask 0  }
 0x19e   :  { %v384_v43 = vmul.f32 %v639_v37, %v383_v41 }
 0x19f   :  { %v184_v42 = vmul.f32 0.5, %v183_v39 }
 0x1a0   :  { %v385_v45 = vmul.f32 0.5, %v384_v43 }
 0x1a1   :  { %v185_v44 = vsub.f32 1.5, %v184_v42 }
 0x1a2   :  { %v641_v46 = vpop.eup %640  ;;  %v386_v48 = vsub.f32 1.5, %v385_v45 }
 0x1a3   :  { %v186_v47 = vmul.f32 %v637_v31, %v185_v44  ;;  %v192_v49 = vmul.f32 %v641_v46, %v180_v32  ;;  %v643_v51 = vpop.eup %642  ;;  %vm198_vm5 = vweird.f32 %v641_v46 }
 0x1a4   :  { %v387_v52 = vmul.f32 %v639_v37, %v386_v48  ;;  %v393_v55 = vmul.f32 %v643_v51, %v381_v38  ;;  %vm399_vm7 = vweird.f32 %v643_v51  ;;  %vm199_vm8 = vmor %vm197_vm6, %vm198_vm5 }
 0x1a5   :  { %v193_v54 = vmul.f32 %v641_v46, %v192_v49  ;;  %v190_v59 = vsel %vm189_vm2, %v637_v31, %v186_v47  ;;  %vm400_vm10 = vmor %vm398_vm9, %vm399_vm7 }
 0x1a6   :  { %v394_v62 = vmul.f32 %v643_v51, %v393_v55  ;;  %v201_v63 = vmul.f32 0.5, %v190_v59  ;;  %v391_v0 = vsel %vm390_vm4, %v639_v37, %v387_v52 }
 0x1a7   :  { %v194_v61 = vmul.f32 0.5, %v193_v54  ;;  %v402_v1 = vmul.f32 0.5, %v391_v0 }
 0x1a8   :  { %v395_v28 = vmul.f32 0.5, %v394_v62  ;;  %v973_v4 = vmul.f32 %v201_v63, %v916_v57  ;;  %v976_v7 = vmul.f32 %v201_v63, %v918_v58 }
 0x1a9   :  { %v195_v3 = vsub.f32 1.5, %v194_v61  ;;  %v979_v29 = vmul.f32 %v402_v1, %v926_v2 }
 0x1aa   :  { %v396_v10 = vsub.f32 1.5, %v395_v28  ;;  %v261_v11 = vmax.f32 %v973_v4, %v976_v7 }
 0x1ab   :  { %v196_v9 = vmul.f32 %v641_v46, %v195_v3  ;;  %v452_v12 = vsel %vm339_vm1, %v979_v29, -1e+30 }
 0x1ac   :  { %v397_v57 = vmul.f32 %v643_v51, %v396_v10  ;;  %263 = vmax.xlane.f32.xlu2 %v261_v11  ;;  %454 = vmax.xlane.f32.xlu1 %v452_v12  ;;  %v319_v11 = vsub.f32 %v965_v50, %v973_v4 }
 0x1ad   :  { %v200_v58 = vsel %vm199_vm8, %v641_v46, %v196_v9 }
 0x1ae   :  { %v202_v14 = vmul.f32 0.5, %v200_v58  ;;  %v401_v2 = vsel %vm400_vm10, %v643_v51, %v397_v57 }
 0x1af   :  { %v403_v19 = vmul.f32 0.5, %v401_v2 }
 0x1b0   :  { %v987_v15 = vmul.f32 %v202_v14, %v930_v5  ;;  %v990_v17 = vmul.f32 %v202_v14, %v932_v6  ;;  %v279_v6 = vpop.xlane.xlu2 %278 }
 0x1b1   :  { %v995_v53 = vmul.f32 %v403_v19, %v940_v18 }
 0x1b2   :  { %v262_v20 = vmax.f32 %v987_v15, %v990_v17  ;;  %v321_v61 = vsub.f32 %v945_v56, %v987_v15  ;;  %v322_v63 = vsub.f32 %v948_v60, %v990_v17 }
 0x1b3   :  { %v453_v21 = vsel %vm339_vm1, %v995_v53, -1e+30  ;;  %v513_v12 = vsub.f32 %v959_v13, %v995_v53 }
 0x1b4   :  { %265 = vmax.xlane.f32.xlu0 %v262_v20  ;;  %456 = vmax.xlane.f32.xlu2 %v453_v21  ;;  %v468_v22 = vpop.xlane.xlu0 %467 }
 0x1ba   :  { %v470_v23 = vpop.xlane.xlu1 %469 }
 0x1bb   :  { %v471_v5 = vmax.f32 %v468_v22, %v470_v23 }
 0x1bd   :  { %v472_v24 = vrot.slane %v471_v5, 4 }
 0x1bf   :  { %v473_v25 = vmax.f32 %v471_v5, %v472_v24 }
 0x1c1   :  { %v474_v35 = vrot.slane %v473_v25, 2 }
 0x1c2   :  { %v277_v26 = vpop.xlane.xlu1 %276 }
 0x1c3   :  { %v280_v27 = vmax.f32 %v277_v26, %v279_v6  ;;  %v475_v36 = vmax.f32 %v473_v25, %v474_v35  ;;  %v512_v6 = vsub.f32 %v953_v8, %v979_v29 }
 0x1c5   :  { %v281_v30 = vrot.slane %v280_v27, 4  ;;  %v476_v32 = vrot.slane %v475_v36, 1 }
 0x1c7   :  { %v282_v31 = vmax.f32 %v280_v27, %v281_v30  ;;  %v477_v37 = vmax.f32 %v475_v36, %v476_v32 }
 0x1c9   :  { %v283_v18 = vrot.slane %v282_v31, 2 }
 0x1cb   :  { %v284_v33 = vmax.f32 %v282_v31, %v283_v18 }
 0x1cd   :  { %v285_v34 = vrot.slane %v284_v33, 1 }
 0x1cf   :  { %v286_v38 = vmax.f32 %v284_v33, %v285_v34 }
 0x1d1   :  { %v301_v39 = vsub.f32 %v945_v56, %v286_v38  ;;  %v302_v41 = vsub.f32 %v948_v60, %v286_v38  ;;  %v1002_v42 = vmax.f32 %v286_v38, %v477_v37  ;;  %v299_v43 = vsub.f32 %v965_v50, %v286_v38 }
 0x1d2   :  { %v300_v44 = vsub.f32 %v968_v16, %v286_v38  ;;  %v320_v60 = vsub.f32 %v968_v16, %v976_v7 }
 0x1d3   :  { %v307_v45 = vmul.f32 1.442695, %v301_v39  ;;  %v309_v46 = vmul.f32 1.442695, %v302_v41  ;;  %v485_v47 = vsub.f32 %v286_v38, %v1002_v42  ;;  %v499_v48 = vsub.f32 %v959_v13, %v1002_v42 }
 0x1d4   :  { %v498_v49 = vsub.f32 %v953_v8, %v1002_v42  ;;  %v303_v54 = vmul.f32 1.442695, %v299_v43  ;;  %v305_v55 = vmul.f32 1.442695, %v300_v44 }
 0x1d5   :  { %644 = vpow2.f32 %v307_v45  ;;  %v486_v51 = vmul.f32 1.442695, %v485_v47  ;;  %v502_v52 = vmul.f32 1.442695, %v499_v48 }
 0x1d6   :  { %646 = vpow2.f32 %v309_v46  ;;  %v500_v59 = vmul.f32 1.442695, %v498_v49 }
 0x1d7   :  { %648 = vpow2.f32 %v486_v51 }
 0x1d8   :  { %650 = vpow2.f32 %v502_v52 }
 0x1d9   :  { %652 = vpow2.f32 %v303_v54 }
 0x1da   :  { %654 = vpow2.f32 %v305_v55 }
 0x1db   :  { %v645_v62 = vpop.eup %644  ;;  %656 = vpow2.f32 %v500_v59 }
 0x1dc   :  { %v647_v0 = vpop.eup %646  ;;  %v325_v1 = vmul.f32 %v645_v62, %v321_v61 }
 0x1dd   :  { %v649_v3 = vpop.eup %648  ;;  %v318_v28 = vadd.f32 %v647_v0, %v645_v62  ;;  %v326_v9 = vmul.f32 %v647_v0, %v322_v63 }
 0x1de   :  { %v651_v10 = vpop.eup %650 }
 0x1df   :  { %v653_v57 = vpop.eup %652  ;;  %v489_v58 = vmul.f32 %v649_v3, %v318_v28  ;;  %v507_v56 = vsel %vm339_vm1, %v651_v10, 0.0  ;;  %v330_v14 = vadd.f32 %v326_v9, %v325_v1 }
 0x1e0   :  { %v655_v2 = vpop.eup %654  ;;  %v323_v19 = vmul.f32 %v653_v57, %v319_v11  ;;  %v515_v20 = vmul.f32 %v513_v12, %v507_v56 }
 0x1e1   :  { %v657_v21 = vpop.eup %656  ;;  %v511_v22 = vadd.f32 %v507_v56, %v489_v58  ;;  %v317_v23 = vadd.f32 %v655_v2, %v653_v57  ;;  %v324_v5 = vmul.f32 %v655_v2, %v320_v60  ;;  %v491_v50 = vmul.f32 %v649_v3, %v330_v14 }
 0x1e2   :  { %v506_v13 = vsel %vm339_vm1, %v657_v21, 0.0 }
 0x1e3   :  { %531 = vadd.xlane.f32.xlu1 %v511_v22  ;;  %v488_v24 = vmul.f32 %v649_v3, %v317_v23  ;;  %v329_v25 = vadd.f32 %v324_v5, %v323_v19  ;;  %v1027_v26 = vadd.f32 %v515_v20, %v491_v50  ;;  %v514_v27 = vmul.f32 %v512_v6, %v506_v13 }
 0x1e5   :  { %v510_v16 = vadd.f32 %v506_v13, %v488_v24  ;;  %v490_v35 = vmul.f32 %v649_v3, %v329_v25 }
 0x1e7   :  { %529 = vadd.xlane.f32.xlu0 %v510_v16  ;;  %v516_v30 = vadd.f32 %v514_v27, %v490_v35 }
 0x1eb   :  { %540 = vadd.xlane.f32.xlu1 %v516_v30 }
 0x21f   :  { %v264_v36 = vpop.xlane.xlu2 %263  ;;  %v455_v18 = vpop.xlane.xlu1 %454 }
 0x227   :  { %v266_v31 = vpop.xlane.xlu0 %265  ;;  %v457_v33 = vpop.xlane.xlu2 %456 }
 0x228   :  { %v267_v32 = vmax.f32 %v264_v36, %v266_v31  ;;  %v458_v34 = vmax.f32 %v455_v18, %v457_v33 }
 0x22a   :  { %v268_v37 = vrot.slane %v267_v32, 4  ;;  %v459_v38 = vrot.slane %v458_v34, 4 }
 0x22c   :  { %v269_v39 = vmax.f32 %v267_v32, %v268_v37  ;;  %v460_v41 = vmax.f32 %v458_v34, %v459_v38 }
 0x22e   :  { %v270_v43 = vrot.slane %v269_v39, 2  ;;  %v461_v8 = vrot.slane %v460_v41, 2 }
 0x230   :  { %v271_v44 = vmax.f32 %v269_v39, %v270_v43  ;;  %v462_v45 = vmax.f32 %v460_v41, %v461_v8 }
 0x232   :  { %v272_v46 = vrot.slane %v271_v44, 1  ;;  %v463_v47 = vrot.slane %v462_v45, 1 }
 0x234   :  { %v273_v48 = vmax.f32 %v271_v44, %v272_v46  ;;  %v464_v49 = vmax.f32 %v462_v45, %v463_v47 }
 0x236   :  { %v289_v51 = vsub.f32 %v987_v15, %v273_v48  ;;  %v290_v52 = vsub.f32 %v990_v17, %v273_v48  ;;  %v287_v54 = vsub.f32 %v973_v4, %v273_v48  ;;  %v1032_v55 = vmax.f32 %v273_v48, %v464_v49 }
 0x237   :  { %v288_v59 = vsub.f32 %v976_v7, %v273_v48 }
 0x238   :  { %v295_v61 = vmul.f32 1.442695, %v289_v51  ;;  %v297_v62 = vmul.f32 1.442695, %v290_v52  ;;  %v291_v63 = vmul.f32 1.442695, %v287_v54  ;;  %v480_v0 = vsub.f32 %v273_v48, %v1032_v55 }
 0x239   :  { %v493_v1 = vsub.f32 %v995_v53, %v1032_v55  ;;  %v492_v3 = vsub.f32 %v979_v29, %v1032_v55  ;;  %v293_v4 = vmul.f32 1.442695, %v288_v59 }
 0x23a   :  { %658 = vpow2.f32 %v295_v61  ;;  %v481_v15 = vmul.f32 1.442695, %v480_v0 }
 0x23b   :  { %660 = vpow2.f32 %v297_v62  ;;  %v496_v17 = vmul.f32 1.442695, %v493_v1  ;;  %v494_v28 = vmul.f32 1.442695, %v492_v3 }
 0x23c   :  { %662 = vpow2.f32 %v291_v63 }
 0x23d   :  { %664 = vpow2.f32 %v481_v15 }
 0x23e   :  { %666 = vpow2.f32 %v496_v17 }
 0x23f   :  { %668 = vpow2.f32 %v293_v4 }
 0x240   :  { %v659_v7 = vpop.eup %658  ;;  %670 = vpow2.f32 %v494_v28 }
 0x241   :  { %v661_v9 = vpop.eup %660 }
 0x242   :  { %v663_v10 = vpop.eup %662  ;;  %v314_v11 = vadd.f32 %v661_v9, %v659_v7 }
 0x243   :  { %v665_v12 = vpop.eup %664 }
 0x244   :  { %v667_v53 = vpop.eup %666  ;;  %v484_v57 = vmul.f32 %v665_v12, %v314_v11 }
 0x245   :  { %v669_v58 = vpop.eup %668  ;;  %v505_v29 = vsel %vm339_vm1, %v667_v53, 0.0 }
 0x246   :  { %v671_v56 = vpop.eup %670  ;;  %v509_v60 = vadd.f32 %v505_v29, %v484_v57  ;;  %v313_v14 = vadd.f32 %v669_v58, %v663_v10 }
 0x247   :  { %v504_v2 = vsel %vm339_vm1, %v671_v56, 0.0 }
 0x248   :  { %520 = vadd.xlane.f32.xlu0 %v509_v60  ;;  %v483_v19 = vmul.f32 %v665_v12, %v313_v14 }
 0x24a   :  { %v508_v20 = vadd.f32 %v504_v2, %v483_v19 }
 0x24c   :  { %518 = vadd.xlane.f32.xlu2 %v508_v20 }
 0x254   :  { %542 = vadd.xlane.f32.xlu2 %v1027_v26 }
 0x256   :  { %v532_v21 = vpop.xlane.xlu1 %531 }
 0x25a   :  { %v530_v22 = vpop.xlane.xlu0 %529 }
 0x25b   :  { %v533_v23 = vadd.f32 %v532_v21, %v530_v22 }
 0x25d   :  { %v534_v5 = vrot.slane %v533_v23, 4 }
 0x25e   :  { %v541_v26 = vpop.xlane.xlu1 %540 }
 0x25f   :  { %v535_v50 = vadd.f32 %v534_v5, %v533_v23 }
 0x261   :  { %v536_v13 = vrot.slane %v535_v50, 2 }
 0x263   :  { %v537_v24 = vadd.f32 %v536_v13, %v535_v50 }
 0x265   :  { %v538_v25 = vrot.slane %v537_v24, 1 }
 0x267   :  { %v539_v6 = vadd.f32 %v538_v25, %v537_v24 }
 0x269   :  { %672 = vrcp.f32 %v539_v6  ;;  %v568_v46 = vand.u32 2147483648, %v539_v6  ;;  %vm562_vm11 = vweird.f32 %v539_v6  ;;  %v566_v47 = vand.u32 2147483647, %v539_v6 }
 0x26a   :  { %674 = vlog2.f32 %v539_v6 }
 0x26b   :  { %v569_v54 = vor.u32 1.1754944e-38, %v568_v46  ;;  %vm567_vm13 = vcmp.eq.f32.partialorder %v566_v47, 8.507059e+37 }
 0x26f   :  { %v673_v35 = vpop.eup %672 }
 0x270   :  { %v558_v36 = vmul.f32 %v673_v35, %v539_v6  ;;  %vm563_vm1 = vweird.f32 %v673_v35  ;;  %v675_v49 = vpop.eup %674 }
 0x271   :  { %vm564_vm12 = vmor %vm562_vm11, %vm563_vm1  ;;  %v555_v0 = vmul.f32 0.6931472, %v675_v49 }
 0x272   :  { %v559_v32 = vsub.f32 1.0, %v558_v36 }
 0x273   :  { %v556_v15 = vadd.f32 %v555_v0, %v1002_v42 }
 0x274   :  { %v560_v39 = vmul.f32 %v673_v35, %v559_v32 }
 0x276   :  { %v561_v44 = vadd.f32 %v673_v35, %v560_v39 }
 0x278   :  { %v565_v51 = vsel %vm564_vm12, %v673_v35, %v561_v44 }
 0x279   :  { %v570_v63 = vsel %vm567_vm13, %v569_v54, %v565_v51 }
 0x2bb   :  { %v521_v16 = vpop.xlane.xlu0 %520 }
 0x2bf   :  { %v519_v40 = vpop.xlane.xlu2 %518 }
 0x2c0   :  { %v522_v27 = vadd.f32 %v521_v16, %v519_v40 }
 0x2c2   :  { %v523_v30 = vrot.slane %v522_v27, 4 }
 0x2c4   :  { %v524_v31 = vadd.f32 %v523_v30, %v522_v27 }
 0x2c6   :  { %v525_v18 = vrot.slane %v524_v31, 2 }
 0x2c7   :  { %v543_v33 = vpop.xlane.xlu2 %542 }
 0x2c8   :  { %v526_v34 = vadd.f32 %v525_v18, %v524_v31  ;;  %v544_v37 = vadd.f32 %v543_v33, %v541_v26 }
 0x2ca   :  { %v527_v38 = vrot.slane %v526_v34, 1  ;;  %v545_v41 = vrot.slane %v544_v37, 4 }
 0x2cc   :  { %v528_v43 = vadd.f32 %v527_v38, %v526_v34  ;;  %v546_v8 = vadd.f32 %v545_v41, %v544_v37 }
 0x2ce   :  { %676 = vlog2.f32 %v528_v43  ;;  %v547_v45 = vrot.slane %v546_v8, 2 }
 0x2d0   :  { %v548_v48 = vadd.f32 %v547_v45, %v546_v8 }
 0x2d2   :  { %v549_v52 = vrot.slane %v548_v48, 1 }
 0x2d4   :  { %v677_v59 = vpop.eup %676  ;;  %v550_v61 = vadd.f32 %v549_v52, %v548_v48 }
 0x2d5   :  { %v552_v62 = vmul.f32 0.6931472, %v677_v59 }
 0x2d6   :  { %v571_v1 = vmul.f32 %v570_v63, %v550_v61 }
 0x2d7   :  { %v553_v3 = vadd.f32 %v552_v62, %v1032_v55 }
 0x2d9   :  { %v572_v17 = vadd.f32 %v571_v1, %v553_v3 }
 0x2db   :  { %v573_v4 = vsub.f32 %v572_v17, %v556_v15 }
 0x2dd   :  { %v574_v28 = vmul.f32 0.000390625, %v573_v4 }
 0x2df   :  { %576 = vst.msk [vmem:[#allocation11] sm:$0x1] %vm575_vm14, %v574_v28 }
 0x2e0   :  { %587 = dma.vmem_to_hbm [thread:$0]  %s583_s4, 16, %s585_s21, [#allocation4]  }
 0x2e1   :  { %828 = dma.done.wait [#allocation4], 16  }
 0x2e2   :  { %829 = vsyncadd [#allocation4], 4294967280 }
 0x2e3   :  { %592 = vsyncpa [#allocation3], 1 }
 0x2e4   :  { %593 = vsyncpa [#allocation6], 1 }
 0x2e5   :  { %594 = vsyncpa [#allocation9], 1 }
 0x2e6   :  { %595 = vsyncpa [#allocation4], 1 }

</bundles_post_ra>
